<compile_context>
chip_gen: v6e
topology: v6e:2x2x1
jax: 0.10.0
libtpu: 0.0.40
codegen_flags: <defaults>
</compile_context>

<pallas_src>
import jax
import jax.numpy as jnp
from jax.experimental import pallas as pl
from jax.experimental.pallas import tpu as pltpu


def _make_kernel(n_eqv_layers: int, b_tile: int, n_pts: int):
    """Fused kernel: `n_eqv_layers` EqvLayers + ReLU + mean pool + head.

    1/N is pre-folded into W_agg and W_head by the wrapper, so the kernel only
    computes sums over N.
    """

    def kernel(x_ref, *refs):
        # refs: [ws_0, b_0, wa_0, ..., ws_{L-1}, b_{L-1}, wa_{L-1}, wh, bh, out_ref]
        out_ref = refs[-1]
        d_prev = x_ref.shape[-1]
        h = x_ref[...]                                    # (bt, N, d_in)
        if h.dtype != jnp.float32:                        # static; no-op for f32 inputs
            h = h.astype(jnp.float32)
        h = h.reshape(b_tile * n_pts, d_prev)             # flat LHS for the big matmul

        idx = 0
        for _ in range(n_eqv_layers):
            ws = refs[idx][...]                           # (d_prev, d_out)
            b = refs[idx + 1][...]                        # (1, d_out)
            wa = refs[idx + 2][...]                       # (d_prev, d_out), pre-scaled by 1/N
            idx += 3
            d_out = ws.shape[1]

            # Full-size self term on the MXU.
            y_self = jnp.dot(h, ws, preferred_element_type=jnp.float32)  # (bt*N, d_out)

            # Mean-first aggregation: XLU reduce over N, then a tiny matmul.
            hm = jnp.sum(h.reshape(b_tile, n_pts, d_prev), axis=1)       # (bt, d_prev)
            agg = jnp.dot(hm, wa, preferred_element_type=jnp.float32)    # (bt, d_out)

            # bias + aggregation via implicit broadcasting, then ReLU (VPU, f32).
            y = y_self.reshape(b_tile, n_pts, d_out) + b + agg[:, None, :]
            h = jnp.maximum(y, 0.0).reshape(b_tile * n_pts, d_out)
            d_prev = d_out

        wh = refs[idx][...]                               # (d_last, nc_pad), pre-scaled by 1/N
        bh = refs[idx + 1][...]                           # (1, nc_pad)
        pooled = jnp.sum(h.reshape(b_tile, n_pts, d_prev), axis=1)       # (bt, d_last)
        out_ref[...] = (jnp.dot(pooled, wh, preferred_element_type=jnp.float32)
                        + bh).astype(out_ref.dtype)       # lane-dense (bt, nc_pad) store

    return kernel


def equivariant_linear_mlp(x, params, *, b_tile=None,
                           vmem_budget_bytes=40 << 20,
                           vmem_limit_bytes=48 << 20):
    """
    x      : (B, N, d_in) float32
    params : dict with keys
             'eqv'  -> list of (W_self^T (d_prev,d_out), b_self (1,d_out), W_agg^T (d_prev,d_out))
             'head' -> (W_head^T (d_last, n_classes), b_head (1, n_classes))
    returns: (B, n_classes) float32
    """
    B, N, d_in = x.shape
    eqv = params["eqv"]
    wh, bh = params["head"]
    n_classes = wh.shape[1]
    n_layers = len(eqv)
    inv_n = 1.0 / float(N)

    dims = [d_in] + [ws.shape[1] for (ws, _, _) in eqv]
    d_max = max(dims)

    # --- lane-dense output: pad classes up to a multiple of 128 lanes ---
    nc_pad = ((n_classes + 127) // 128) * 128

    # --- VMEM-budget-driven batch tile ---
    # per-cloud bytes: 2x double-buffered x block + ~4 live full-size activation
    # values + 2x double-buffered output block (all f32).
    per_bt = 4 * (2 * N * d_in + 4 * N * d_max + 2 * nc_pad)
    bt_budget = max(8, (int(vmem_budget_bytes) // per_bt) // 8 * 8)
    bt = min(bt_budget, B) if b_tile is None else min(b_tile, B)
    # Let the 'parallel' axis shard across v7x's 2 TensorCores when B is large
    # enough to keep the sublane constraint (bt multiple of 8) satisfied.
    if B >= 16:
        half = ((pl.cdiv(B, 2) + 7) // 8) * 8
        bt = min(bt, half)
    if bt < B:
        bt = max(8, (bt // 8) * 8)        # output block sublane dim must be 8-aligned
    grid_b = pl.cdiv(B, bt)
    b_pad = grid_b * bt
    x_p = x if b_pad == B else jnp.pad(x, ((0, b_pad - B), (0, 0), (0, 0)))

    # --- weight prep: fold 1/N into W_agg and W_head; pad head to nc_pad ---
    wh_p = jnp.pad(wh * inv_n, ((0, 0), (0, nc_pad - n_classes)))
    bh_p = jnp.pad(bh, ((0, 0), (0, nc_pad - n_classes)))

    operands = [x_p]
    in_specs = [pl.BlockSpec((bt, N, d_in), lambda b: (b, 0, 0))]
    for (ws, bb, wa) in eqv:
        for p in (ws, bb, wa * inv_n):
            operands.append(p)
            # Constant block index across the grid -> single-buffered.
            in_specs.append(pl.BlockSpec(p.shape, lambda b: (0, 0),
                                         pipeline_mode=pl.Buffered(1)))
    for p in (wh_p, bh_p):
        operands.append(p)
        in_specs.append(pl.BlockSpec(p.shape, lambda b: (0, 0),
                                     pipeline_mode=pl.Buffered(1)))

    out_spec = pl.BlockSpec((bt, nc_pad), lambda b: (b, 0))

    # Advisory cost estimate for the surrounding XLA schedule.
    flops = 0
    prev = d_in
    for (ws, _, _) in eqv:
        d_out = ws.shape[1]
        flops += 2 * b_pad * N * prev * d_out        # self matmul
        flops += 2 * b_pad * prev * d_out            # mean-first agg matmul
        prev = d_out
    flops += 2 * b_pad * prev * nc_pad               # head
    bytes_accessed = (int(x_p.size) + sum(int(p.size) for p in operands[1:])
                      + b_pad * nc_pad) * 4
    ce = pl.CostEstimate(flops=int(flops), transcendentals=0,
                         bytes_accessed=int(bytes_accessed))

    fn = pl.pallas_call(
        _make_kernel(n_layers, bt, N),
        out_shape=jax.ShapeDtypeStruct((b_pad, nc_pad), jnp.float32),
        grid_spec=pltpu.PrefetchScalarGridSpec(
            num_scalar_prefetch=0,
            grid=(grid_b,),
            in_specs=in_specs,
            out_specs=out_spec,
        ),
        compiler_params=pltpu.CompilerParams(
            dimension_semantics=("parallel",),
            vmem_limit_bytes=int(vmem_limit_bytes)),
        cost_estimate=ce,
    )
    out = fn(*operands)
    return out[:B, :n_classes]


def init_params(key, d_in=3, hidden_dims=(32, 16), n_classes=8):
    """Deterministic parameter init (shapes match the PyTorch module, pre-transposed)."""
    params = {"eqv": [], "head": None}
    prev = d_in
    for h in hidden_dims:
        key, k1, k2, k3 = jax.random.split(key, 4)
        ws = 0.1 * jax.random.normal(k1, (prev, h), jnp.float32)   # W_self^T
        b = 0.1 * jax.random.normal(k2, (1, h), jnp.float32)       # b_self
        wa = 0.1 * jax.random.normal(k3, (prev, h), jnp.float32)   # W_agg^T
        params["eqv"].append((ws, b, wa))
        prev = h
    key, k1, k2 = jax.random.split(key, 3)
    wh = 0.1 * jax.random.normal(k1, (prev, n_classes), jnp.float32)
    bh = 0.1 * jax.random.normal(k2, (1, n_classes), jnp.float32)
    params["head"] = (wh, bh)
    return params


def reference_forward(x, params):
    """Pure-JAX reference matching the PyTorch forward (mean-first aggregation)."""
    h = x
    for (ws, b, wa) in params["eqv"]:
        m = jnp.mean(h, axis=1, keepdims=True)
        h = h @ ws + b + m @ wa
        h = jnp.maximum(h, 0.0)
    pooled = jnp.mean(h, axis=1)
    wh, bh = params["head"]
    return pooled @ wh + bh


if __name__ == "__main__":
    B, N, d_in = 2, 8, 3
    hidden_dims = (32, 16)
    n_classes = 8

    key = jax.random.PRNGKey(0)
    key, kx = jax.random.split(key)
    x = jax.random.normal(kx, (B, N, d_in), jnp.float32)
    params = init_params(key, d_in=d_in, hidden_dims=hidden_dims, n_classes=n_classes)

    out = equivariant_linear_mlp(x, params)
    out = jax.block_until_ready(out)

    ref = reference_forward(x, params)
    assert out.shape == (B, n_classes), out.shape
    assert jnp.allclose(out, ref, atol=1e-5, rtol=1e-5), (out, ref)

    print("KERNEL_OK")
</pallas_src>

<mosaic_0001>
module attributes {stable_mosaic.version = 11 : i64} {
  func.func @kernel(%arg0: i32, %arg1: memref<2x8x3xf32, #tpu.memory_space<vmem>>, %arg2: memref<3x32xf32, #tpu.memory_space<vmem>>, %arg3: memref<1x32xf32, #tpu.memory_space<vmem>>, %arg4: memref<3x32xf32, #tpu.memory_space<vmem>>, %arg5: memref<32x16xf32, #tpu.memory_space<vmem>>, %arg6: memref<1x16xf32, #tpu.memory_space<vmem>>, %arg7: memref<32x16xf32, #tpu.memory_space<vmem>>, %arg8: memref<16x128xf32, #tpu.memory_space<vmem>>, %arg9: memref<1x128xf32, #tpu.memory_space<vmem>>, %arg10: memref<2x128xf32, #tpu.memory_space<vmem>>) attributes {dimension_semantics = [#tpu.dimension_semantics<parallel>], iteration_bounds = array<i64: 1>, scalar_prefetch = 0 : i64, scratch_operands = 0 : i64, tpu.core_type = #tpu.core_type<tc>, window_params = [{transform_indices = @transform_0, window_bounds = array<i64: 2, 8, 3>}, {pipeline_mode = #tpu.pipeline_mode<synchronous>, transform_indices = @transform_1, window_bounds = array<i64: 3, 32>}, {pipeline_mode = #tpu.pipeline_mode<synchronous>, transform_indices = @transform_2, window_bounds = array<i64: 1, 32>}, {pipeline_mode = #tpu.pipeline_mode<synchronous>, transform_indices = @transform_3, window_bounds = array<i64: 3, 32>}, {pipeline_mode = #tpu.pipeline_mode<synchronous>, transform_indices = @transform_4, window_bounds = array<i64: 32, 16>}, {pipeline_mode = #tpu.pipeline_mode<synchronous>, transform_indices = @transform_5, window_bounds = array<i64: 1, 16>}, {pipeline_mode = #tpu.pipeline_mode<synchronous>, transform_indices = @transform_6, window_bounds = array<i64: 32, 16>}, {pipeline_mode = #tpu.pipeline_mode<synchronous>, transform_indices = @transform_7, window_bounds = array<i64: 16, 128>}, {pipeline_mode = #tpu.pipeline_mode<synchronous>, transform_indices = @transform_8, window_bounds = array<i64: 1, 128>}, {transform_indices = @transform_9, window_bounds = array<i64: 2, 128>}]} {
    %c0 = arith.constant 0 : index
    %c0_0 = arith.constant 0 : index
    %c0_1 = arith.constant 0 : index
    %0 = vector.load %arg1[%c0, %c0_0, %c0_1] : memref<2x8x3xf32, #tpu.memory_space<vmem>>, vector<2x8x3xf32>
    %1 = vector.shape_cast %0 : vector<2x8x3xf32> to vector<16x3xf32>
    %c0_2 = arith.constant 0 : index
    %c0_3 = arith.constant 0 : index
    %2 = vector.load %arg2[%c0_2, %c0_3] : memref<3x32xf32, #tpu.memory_space<vmem>>, vector<3x32xf32>
    %c0_4 = arith.constant 0 : index
    %c0_5 = arith.constant 0 : index
    %3 = vector.load %arg3[%c0_4, %c0_5] : memref<1x32xf32, #tpu.memory_space<vmem>>, vector<1x32xf32>
    %c0_6 = arith.constant 0 : index
    %c0_7 = arith.constant 0 : index
    %4 = vector.load %arg4[%c0_6, %c0_7] : memref<3x32xf32, #tpu.memory_space<vmem>>, vector<3x32xf32>
    %cst = arith.constant dense<0.000000e+00> : vector<16x32xf32>
    %5 = tpu.matmul %1, %2, %cst {dimension_numbers = #tpu.dot_dimension_numbers<[1], [0], [0], [1], [0, 0, 1, 1], [], []>} : vector<16x3xf32>, vector<3x32xf32>, vector<16x32xf32> -> vector<16x32xf32>
    %6 = vector.shape_cast %1 : vector<16x3xf32> to vector<2x8x3xf32>
    %cst_8 = arith.constant dense<0.000000e+00> : vector<2x3xf32>
    %7 = vector.multi_reduction <add>, %6, %cst_8 [1] : vector<2x8x3xf32> to vector<2x3xf32>
    %cst_9 = arith.constant dense<0.000000e+00> : vector<2x32xf32>
    %8 = tpu.matmul %7, %4, %cst_9 {dimension_numbers = #tpu.dot_dimension_numbers<[1], [0], [0], [1], [0, 0, 1, 1], [], []>} : vector<2x3xf32>, vector<3x32xf32>, vector<2x32xf32> -> vector<2x32xf32>
    %9 = vector.shape_cast %5 : vector<16x32xf32> to vector<2x8x32xf32>
    %10 = vector.shape_cast %3 : vector<1x32xf32> to vector<1x1x32xf32>
    %11 = vector.broadcast %10 : vector<1x1x32xf32> to vector<2x8x32xf32>
    %12 = arith.addf %9, %11 : vector<2x8x32xf32>
    %13 = vector.shape_cast %8 : vector<2x32xf32> to vector<2x1x32xf32>
    %14 = vector.broadcast %13 : vector<2x1x32xf32> to vector<2x8x32xf32>
    %15 = arith.addf %12, %14 : vector<2x8x32xf32>
    %cst_10 = arith.constant 0.000000e+00 : f32
    %16 = vector.broadcast %cst_10 : f32 to vector<2x8x32xf32>
    %17 = arith.maximumf %15, %16 : vector<2x8x32xf32>
    %18 = vector.shape_cast %17 : vector<2x8x32xf32> to vector<16x32xf32>
    %c0_11 = arith.constant 0 : index
    %c0_12 = arith.constant 0 : index
    %19 = vector.load %arg5[%c0_11, %c0_12] : memref<32x16xf32, #tpu.memory_space<vmem>>, vector<32x16xf32>
    %c0_13 = arith.constant 0 : index
    %c0_14 = arith.constant 0 : index
    %20 = vector.load %arg6[%c0_13, %c0_14] : memref<1x16xf32, #tpu.memory_space<vmem>>, vector<1x16xf32>
    %c0_15 = arith.constant 0 : index
    %c0_16 = arith.constant 0 : index
    %21 = vector.load %arg7[%c0_15, %c0_16] : memref<32x16xf32, #tpu.memory_space<vmem>>, vector<32x16xf32>
    %cst_17 = arith.constant dense<0.000000e+00> : vector<16x16xf32>
    %22 = tpu.matmul %18, %19, %cst_17 {dimension_numbers = #tpu.dot_dimension_numbers<[1], [0], [0], [1], [0, 0, 1, 1], [], []>} : vector<16x32xf32>, vector<32x16xf32>, vector<16x16xf32> -> vector<16x16xf32>
    %23 = vector.shape_cast %18 : vector<16x32xf32> to vector<2x8x32xf32>
    %cst_18 = arith.constant dense<0.000000e+00> : vector<2x32xf32>
    %24 = vector.multi_reduction <add>, %23, %cst_18 [1] : vector<2x8x32xf32> to vector<2x32xf32>
    %cst_19 = arith.constant dense<0.000000e+00> : vector<2x16xf32>
    %25 = tpu.matmul %24, %21, %cst_19 {dimension_numbers = #tpu.dot_dimension_numbers<[1], [0], [0], [1], [0, 0, 1, 1], [], []>} : vector<2x32xf32>, vector<32x16xf32>, vector<2x16xf32> -> vector<2x16xf32>
    %26 = vector.shape_cast %22 : vector<16x16xf32> to vector<2x8x16xf32>
    %27 = vector.shape_cast %20 : vector<1x16xf32> to vector<1x1x16xf32>
    %28 = vector.broadcast %27 : vector<1x1x16xf32> to vector<2x8x16xf32>
    %29 = arith.addf %26, %28 : vector<2x8x16xf32>
    %30 = vector.shape_cast %25 : vector<2x16xf32> to vector<2x1x16xf32>
    %31 = vector.broadcast %30 : vector<2x1x16xf32> to vector<2x8x16xf32>
    %32 = arith.addf %29, %31 : vector<2x8x16xf32>
    %cst_20 = arith.constant 0.000000e+00 : f32
    %33 = vector.broadcast %cst_20 : f32 to vector<2x8x16xf32>
    %34 = arith.maximumf %32, %33 : vector<2x8x16xf32>
    %35 = vector.shape_cast %34 : vector<2x8x16xf32> to vector<16x16xf32>
    %c0_21 = arith.constant 0 : index
    %c0_22 = arith.constant 0 : index
    %36 = vector.load %arg8[%c0_21, %c0_22] : memref<16x128xf32, #tpu.memory_space<vmem>>, vector<16x128xf32>
    %c0_23 = arith.constant 0 : index
    %c0_24 = arith.constant 0 : index
    %37 = vector.load %arg9[%c0_23, %c0_24] : memref<1x128xf32, #tpu.memory_space<vmem>>, vector<1x128xf32>
    %38 = vector.shape_cast %35 : vector<16x16xf32> to vector<2x8x16xf32>
    %cst_25 = arith.constant dense<0.000000e+00> : vector<2x16xf32>
    %39 = vector.multi_reduction <add>, %38, %cst_25 [1] : vector<2x8x16xf32> to vector<2x16xf32>
    %cst_26 = arith.constant dense<0.000000e+00> : vector<2x128xf32>
    %40 = tpu.matmul %39, %36, %cst_26 {dimension_numbers = #tpu.dot_dimension_numbers<[1], [0], [0], [1], [0, 0, 1, 1], [], []>} : vector<2x16xf32>, vector<16x128xf32>, vector<2x128xf32> -> vector<2x128xf32>
    %41 = vector.broadcast %37 : vector<1x128xf32> to vector<2x128xf32>
    %42 = arith.addf %40, %41 : vector<2x128xf32>
    %c0_27 = arith.constant 0 : index
    %c0_28 = arith.constant 0 : index
    %43 = vector.load %arg10[%c0_27, %c0_28] : memref<2x128xf32, #tpu.memory_space<vmem>>, vector<2x128xf32>
    tpu.vector_store %arg10[%c0_27, %c0_28], %42 {strides = array<i32>} : memref<2x128xf32, #tpu.memory_space<vmem>>, vector<2x128xf32>,
    return
  }
  func.func @transform_0(%arg0: i32) -> (i32, i32, i32) {
    %c0_i32 = arith.constant 0 : i32
    %c0_i32_0 = arith.constant 0 : i32
    %c0_i32_1 = arith.constant 0 : i32
    return %arg0, %c0_i32, %c0_i32_0 : i32, i32, i32
  }
  func.func @transform_1(%arg0: i32) -> (i32, i32) {
    %c0_i32 = arith.constant 0 : i32
    %c0_i32_0 = arith.constant 0 : i32
    %c0_i32_1 = arith.constant 0 : i32
    return %c0_i32, %c0_i32_0 : i32, i32
  }
  func.func @transform_2(%arg0: i32) -> (i32, i32) {
    %c0_i32 = arith.constant 0 : i32
    %c0_i32_0 = arith.constant 0 : i32
    %c0_i32_1 = arith.constant 0 : i32
    return %c0_i32, %c0_i32_0 : i32, i32
  }
  func.func @transform_3(%arg0: i32) -> (i32, i32) {
    %c0_i32 = arith.constant 0 : i32
    %c0_i32_0 = arith.constant 0 : i32
    %c0_i32_1 = arith.constant 0 : i32
    return %c0_i32, %c0_i32_0 : i32, i32
  }
  func.func @transform_4(%arg0: i32) -> (i32, i32) {
    %c0_i32 = arith.constant 0 : i32
    %c0_i32_0 = arith.constant 0 : i32
    %c0_i32_1 = arith.constant 0 : i32
    return %c0_i32, %c0_i32_0 : i32, i32
  }
  func.func @transform_5(%arg0: i32) -> (i32, i32) {
    %c0_i32 = arith.constant 0 : i32
    %c0_i32_0 = arith.constant 0 : i32
    %c0_i32_1 = arith.constant 0 : i32
    return %c0_i32, %c0_i32_0 : i32, i32
  }
  func.func @transform_6(%arg0: i32) -> (i32, i32) {
    %c0_i32 = arith.constant 0 : i32
    %c0_i32_0 = arith.constant 0 : i32
    %c0_i32_1 = arith.constant 0 : i32
    return %c0_i32, %c0_i32_0 : i32, i32
  }
  func.func @transform_7(%arg0: i32) -> (i32, i32) {
    %c0_i32 = arith.constant 0 : i32
    %c0_i32_0 = arith.constant 0 : i32
    %c0_i32_1 = arith.constant 0 : i32
    return %c0_i32, %c0_i32_0 : i32, i32
  }
  func.func @transform_8(%arg0: i32) -> (i32, i32) {
    %c0_i32 = arith.constant 0 : i32
    %c0_i32_0 = arith.constant 0 : i32
    %c0_i32_1 = arith.constant 0 : i32
    return %c0_i32, %c0_i32_0 : i32, i32
  }
  func.func @transform_9(%arg0: i32) -> (i32, i32) {
    %c0_i32 = arith.constant 0 : i32
    %c0_i32_0 = arith.constant 0 : i32
    return %arg0, %c0_i32 : i32, i32
  }
}

</mosaic_0001>

<bundles_post_ra>
// kernel: tpu_custom_call.1
= control target key start
LH: loop header
LB: loop body
LE: loop exit
PB: predicated region body
PF: predicated region fallthrough
CT: control target
= control target key end

     0   :  { %vm45_vm0 = vcmask 1042432   ;;  %v697_v2 = vmov 0.0   ;;  %vm698_vm1 = vmmov 0   ;;  %vm38_vm2 = vcmask 23552   ;;  %s837_s0 = inlined_call_operand.vmem [shape: f32[2,8,3], index: 0, kind: input, shape index: {}]   ;;  %s838_s1 = inlined_call_operand.vmem [shape: f32[3,32], index: 1, kind: input, shape index: {}]   ;;  %s839_s2 = inlined_call_operand.vmem [shape: f32[1,32], index: 2, kind: input, shape index: {}]   ;;  %s840_s3 = inlined_call_operand.vmem [shape: f32[3,32], index: 3, kind: input, shape index: {}]   ;;  %s841_s4 = inlined_call_operand.vmem [shape: f32[32,16], index: 4, kind: input, shape index: {}]   ;;  %s842_s5 = inlined_call_operand.vmem [shape: f32[1,16], index: 5, kind: input, shape index: {}]   ;;  %s843_s6 = inlined_call_operand.vmem [shape: f32[32,16], index: 6, kind: input, shape index: {}]   ;;  %s844_s7 = inlined_call_operand.vmem [shape: f32[16,128], index: 7, kind: input, shape index: {}]   ;;  %s845_s8 = inlined_call_operand.vmem [shape: f32[1,128], index: 8, kind: input, shape index: {}]   ;;  %s846_s9 = inlined_call_operand.hbm [shape: f32[2,128], index: 9, kind: output, shape index: {}]  }
   0x1   :  { %v37_v0 = vld [vmem:[%s840_s3] sm:$0x7]  ;;  %637 = vmatprep.subr.mxu1 %v697_v2  ;;  %639 = vmatprep.mubr.msk.f32.mxu1 %vm698_vm1, %v697_v2  ;;  %v34_v4 = vld [vmem:[%s837_s0 + $0x8] sm:$0xff] }
   0x2   :  { %v33_v1 = vld [vmem:[%s837_s0] sm:$0xff]  ;;  %638 = vmatpush3.msk.msra.mxu1 %vm45_vm0, %v37_v0  ;;  %v131_v6 = vsel %vm38_vm2, %v34_v4, 0.0 }
   0x3   :  { %v35_v3 = vld [vmem:[%s838_s1] sm:$0x7]  ;;  %v124_v5 = vsel %vm38_vm2, %v33_v1, 0.0 }
   0x4   :  { %632 = vmatprep.subr.msk.mxu0 %vm45_vm0, %v35_v3 }
   0x5   :  { %14 = vsyncpa [#allocation3], 0  ;;  %v125_v7 = vrot.slane %v124_v5, 4  ;;  %v132_v8 = vrot.slane %v131_v6, 4  ;;  %633 = vmatpush3.msk.msra.mxu0 %vm45_vm0, %v35_v3  ;;  %634 = vmatprep.mubr.msk.f32.mxu0 %vm38_vm2, %v33_v1  ;;  %vm140_vm3 = vcmask 1041409   ;;  %v265_v20 = vld [vmem:[%s841_s4 + $0x18] sm:$0xff]  ;;  %v229_v30 = vlaneseq }
   0x6   :  { %635 = vmatmul.mubr.msk.f32.vlgmr.msra.gmra.mxu0 %vm38_vm2, %v34_v4  ;;  %653 = vmatprep.subr.mxu1 %v697_v2  ;;  %v264_v21 = vld [vmem:[%s841_s4 + $0x10] sm:$0xff]  ;;  %v263_v22 = vld [vmem:[%s841_s4 + $0x8] sm:$0xff]  ;;  %v262_v23 = vld [vmem:[%s841_s4] sm:$0xff]  ;;  %v699_v28 = vmov 1966171168   ;;  %vm271_vm4 = vcmask 261120  }
   0x7   :  { %v126_v9 = vadd.f32 %v125_v7, %v124_v5  ;;  %v133_v10 = vadd.f32 %v132_v8, %v131_v6  ;;  %642 = vmatprep.subr.mxu0 %v265_v20  ;;  %v270_v24 = vld [vmem:[%s843_s6 + $0x18] sm:$0xff]  ;;  %v269_v25 = vld [vmem:[%s843_s6 + $0x10] sm:$0xff]  ;;  %v268_v26 = vld [vmem:[%s843_s6 + $0x8] sm:$0xff]  ;;  %v227_v29 = vunpack.c.l.s4 %v699_v28  ;;  %v230_v32 = vshrl.u32 %v229_v30, 7  ;;  %s700_s14 = smov [#allocation2]  }
   0x8   :  { %643 = vmatpush3.msra.mxu0 %v265_v20  ;;  %v267_v27 = vld [vmem:[%s843_s6] sm:$0xff]  ;;  %v488_v4 = vld [vmem:[%s844_s7 + $0x8] sm:$0xff]  ;;  %vm490_vm5 = vcmask 130048   ;;  %s593_s15 = sshll.u32 %s700_s14, 4  ;;  %s594_s15 = int_to_ptr.vmem [resolvable:$true] %s593_s15 }
   0x9   :  { %v127_v11 = vrot.slane %v126_v9, 2  ;;  %v134_v12 = vrot.slane %v133_v10, 2  ;;  %644 = vmatprep.subr.mxu0 %v264_v21  ;;  %v228_v31 = vunpack.c.0.s8 %v227_v29  ;;  %v606_v36 = vld [vmem:[%s839_s2] ss:$0 sm:$0xff]  ;;  %v250_v39 = vsub.s32 0, %v230_v32  ;;  %s675_s16 = scalar_lea.vmem %s594_s15, 32  ;;  %p680_p1 = scmp.lt.s32.totalorder %s594_s15, %s594_s15 }
   0xa   :  { %645 = vmatpush3.msra.mxu0 %v264_v21  ;;  %v487_v5 = vld [vmem:[%s844_s7] sm:$0xff]  ;;  %p676_p0 = scmp.ne.s32.totalorder %s594_s15, %s675_s16  ;;  %p681_p2 = scmp.lt.s32.totalorder %s675_s16, %s675_s16 }
   0xb   :  { %v128_v13 = vadd.f32 %v127_v11, %v126_v9  ;;  %v135_v14 = vadd.f32 %v134_v12, %v133_v10  ;;  %646 = vmatprep.subr.mxu0 %v263_v22  ;;  %v231_v34 = vsub.s32 %v228_v31, %v230_v32 }
   0xc   :  { %647 = vmatpush3.msra.mxu0 %v263_v22  ;;  %p682_p3 = por %p681_p2, %p680_p1 }
   0xd   :  { %v129_v15 = vrot.slane %v128_v13, 1  ;;  %v136_v16 = vrot.slane %v135_v14, 1  ;;  %648 = vmatprep.subr.mxu0 %v262_v23 }
   0xe   :  { %649 = vmatpush3.msra.mxu0 %v262_v23  ;;  %p683_p4 = pnand %p682_p3, %p676_p0 }
   0xf   :  { %v130_v17 = vadd.f32 %v129_v15, %v128_v13  ;;  %v137_v18 = vadd.f32 %v136_v16, %v135_v14  ;;  %664 = vmatprep.subr.mxu0 %v697_v2  ;;  %v610_v13 = vld [vmem:[%s842_s5] ss:$0 sm:$0xff] }
  0x11   :  { %v141_v19 = vsel %vm140_vm3, %v137_v18, %v130_v17 }
  0x12   :  { %640 = vmatmul.mubr.msk.f32.vlgmr.msra.gmra.mxu1 %vm38_vm2, %v141_v19 }
  0x13   :  { %661 = vmatprep.mubr.msk.f32.mxu1 %vm698_vm1, %v697_v2  ;;  %654 = vmatpush3.msra.mxu1 %v270_v24 }
  0x14   :  { %655 = vmatprep.subr.mxu1 %v697_v2 }
  0x15   :  { %656 = vmatpush3.msra.mxu1 %v269_v25 }
  0x16   :  { %657 = vmatprep.subr.mxu1 %v697_v2 }
  0x17   :  { %658 = vmatpush3.msra.mxu1 %v268_v26 }
  0x18   :  { %659 = vmatprep.subr.mxu1 %v697_v2 }
  0x19   :  { %660 = vmatpush3.msra.mxu1 %v267_v27 }
  0xc6   :  { %v636_v33 = vpop.f32.mrf.mxu0 }
  0xc7   :  { %v224_v46 = vadd.f32 %v636_v33, %v606_v36 }
  0xc8   :  { %v115_v37 = vpop.f32.mrf.mxu0 }
  0xc9   :  { %v223_v43 = vadd.f32 %v606_v36, %v115_v37  ;;  %v611_v37 = vld [vmem:[%s845_s8] ss:$0 sm:$0xff] }
  0xd2   :  { %v213_v35 = vpop.f32.mrf.mxu1 }
  0xd3   :  { %v232_v38 = vrot.slane %v213_v35, %v231_v34 }
  0xd4   :  { %v641_v40 = vpop.f32.mrf.mxu1 }
  0xd5   :  { %v233_v41 = vcombine.high %v232_v38, %v232_v38  ;;  %v240_v42 = vrot.slane %v232_v38, %v231_v34 }
  0xd7   :  { %v247_v44 = vrot.slane %v233_v41, %v231_v34  ;;  %v251_v45 = vrot.slane %v240_v42, %v250_v39 }
  0xd9   :  { %v255_v47 = vrot.slane %v247_v44, %v250_v39  ;;  %v258_v48 = vadd.f32 %v251_v45, %v223_v43 }
  0xdb   :  { %v259_v49 = vadd.f32 %v255_v47, %v224_v46  ;;  %v260_v50 = vmax.f32 %v258_v48, 0.0 }
  0xdd   :  { %v261_v51 = vmax.f32 %v259_v49, 0.0  ;;  %v353_v52 = vsel %vm271_vm4, %v260_v50, 0.0  ;;  %650 = vmatprep.mubr.msk.f32.mxu0 %vm271_vm4, %v260_v50 }
  0xde   :  { %v354_v53 = vrot.slane %v353_v52, 4 }
  0xdf   :  { %v360_v54 = vsel %vm271_vm4, %v261_v51, 0.0  ;;  %651 = vmatmul.mubr.msk.f32.vlgmr.msra.gmra.mxu0 %vm271_vm4, %v261_v51 }
  0xe0   :  { %v361_v55 = vrot.slane %v360_v54, 4  ;;  %v355_v56 = vadd.f32 %v354_v53, %v353_v52  ;;  %668 = vmatprep.mubr.msk.f32.mxu0 %vm698_vm1, %v697_v2  ;;  %665 = vmatpush3.msra.mxu0 %v488_v4 }
  0xe1   :  { %666 = vmatprep.subr.mxu0 %v697_v2 }
  0xe2   :  { %v362_v57 = vadd.f32 %v361_v55, %v360_v54  ;;  %v356_v58 = vrot.slane %v355_v56, 2  ;;  %667 = vmatpush3.msra.mxu0 %v487_v5 }
  0xe4   :  { %v363_v59 = vrot.slane %v362_v57, 2  ;;  %v357_v60 = vadd.f32 %v356_v58, %v355_v56 }
  0xe6   :  { %v364_v61 = vadd.f32 %v363_v59, %v362_v57  ;;  %v358_v62 = vrot.slane %v357_v60, 1 }
  0xe8   :  { %v365_v63 = vrot.slane %v364_v61, 1  ;;  %v359_v1 = vadd.f32 %v358_v62, %v357_v60 }
  0xea   :  { %v366_v0 = vadd.f32 %v365_v63, %v364_v61 }
  0xec   :  { %v369_v3 = vsel %vm140_vm3, %v366_v0, %v359_v1 }
  0xed   :  { %662 = vmatmul.mubr.msk.f32.vlgmr.msra.gmra.mxu1 %vm271_vm4, %v369_v3 }
 0x19f   :  { %v652_v6 = vpop.f32.mrf.mxu0 }
 0x1a0   :  { %v449_v17 = vadd.f32 %v652_v6, %v610_v13 }
 0x1a1   :  { %v344_v9 = vpop.f32.mrf.mxu0 }
 0x1a2   :  { %v448_v14 = vadd.f32 %v610_v13, %v344_v9 }
 0x1ad   :  { %v438_v7 = vpop.f32.mrf.mxu1 }
 0x1ae   :  { %v457_v8 = vrot.slane %v438_v7, %v231_v34 }
 0x1af   :  { %v663_v10 = vpop.f32.mrf.mxu1 }
 0x1b0   :  { %v458_v11 = vcombine.high %v457_v8, %v457_v8  ;;  %v465_v12 = vrot.slane %v457_v8, %v231_v34 }
 0x1b2   :  { %v472_v15 = vrot.slane %v458_v11, %v231_v34  ;;  %v476_v16 = vrot.slane %v465_v12, %v250_v39 }
 0x1b4   :  { %v480_v18 = vrot.slane %v472_v15, %v250_v39  ;;  %v483_v19 = vadd.f32 %v476_v16, %v448_v14 }
 0x1b6   :  { %v484_v2 = vadd.f32 %v480_v18, %v449_v17  ;;  %v485_v20 = vmax.f32 %v483_v19, 0.0 }
 0x1b8   :  { %v486_v21 = vmax.f32 %v484_v2, 0.0  ;;  %v491_v22 = vsel %vm490_vm5, %v485_v20, 0.0 }
 0x1b9   :  { %v492_v23 = vrot.slane %v491_v22, 4 }
 0x1ba   :  { %v498_v24 = vsel %vm490_vm5, %v486_v21, 0.0 }
 0x1bb   :  { %v493_v25 = vadd.f32 %v492_v23, %v491_v22  ;;  %v499_v26 = vrot.slane %v498_v24, 4 }
 0x1bd   :  { %v494_v27 = vrot.slane %v493_v25, 2  ;;  %v500_v28 = vadd.f32 %v499_v26, %v498_v24 }
 0x1bf   :  { %v495_v29 = vadd.f32 %v494_v27, %v493_v25  ;;  %v501_v30 = vrot.slane %v500_v28, 2 }
 0x1c1   :  { %v496_v31 = vrot.slane %v495_v29, 1  ;;  %v502_v32 = vadd.f32 %v501_v30, %v500_v28 }
 0x1c3   :  { %v503_v33 = vrot.slane %v502_v32, 1  ;;  %v497_v34 = vadd.f32 %v496_v31, %v495_v29 }
 0x1c5   :  { %v504_v35 = vadd.f32 %v503_v33, %v502_v32 }
 0x1c7   :  { %v513_v36 = vsel %vm140_vm3, %v504_v35, %v497_v34 }
 0x1c8   :  { %669 = vmatmul.mubr.msk.f32.vlgmr.msra.gmra.mxu0 %vm490_vm5, %v513_v36 }
 0x288   :  { %v582_v38 = vpop.f32.mrf.mxu0 }
 0x289   :  { %v583_v39 = vadd.f32 %v611_v37, %v582_v38 }
 0x28a   :  { %v670_v40 = vpop.f32.mrf.mxu0 }
 0x28b   :  { %586 = vst [vmem:[#allocation2] sm:$0x3] %v583_v39 }
 0x28c   :  { %686 = shalt.err (!%p683_p4)
}
 0x28d   :  { %596 = dma.vmem_to_hbm [thread:$0]  %s594_s15, 32, %s846_s9, [#allocation3]  }
 0x28e   :  { %695 = dma.done.wait [#allocation3], 32  }
 0x28f   :  { %696 = vsyncadd [#allocation3], 4294967264 }
 0x290   :  { %600 = vsyncpa [#allocation3], 1 }

</bundles_post_ra>
